<compile_context>
chip_gen: v6e
topology: v6e:2x2x1
jax: 0.10.0
libtpu: 0.0.40
codegen_flags: <defaults>
</compile_context>

<pallas_src>
import jax
import jax.numpy as jnp
from jax.experimental import pallas as pl
from jax.experimental.pallas import tpu as pltpu

BN_EPS = 1e-5


def shrinkage_kernel(x_ref, w1f_ref, w2t_ref, bcast_ref, bias_ref, o_ref):
    """One grid step: TB samples, everything lane-dense (last dim = C*L)."""
    x = x_ref[...].astype(jnp.float32)                          # (TB, C*L)
    x_abs = jnp.abs(x)

    # mean over channels of the per-channel GAP
    #   == mean of |x| over all C*L elements (since gap_size == 1).
    average = jnp.mean(x_abs, axis=1, keepdims=True)            # (TB, 1)

    bias = bias_ref[...]                                        # (2, C)
    b1 = bias[0:1, :]                                           # BN-folded bias
    b2 = bias[1:2, :]

    # GAP + Linear1 + BatchNorm(eval) folded into one (C*L, C) matmul.
    h = jnp.dot(x_abs, w1f_ref[...], preferred_element_type=jnp.float32) + b1
    h = jnp.maximum(h, 0.0)                                     # ReLU
    h = jnp.dot(h, w2t_ref[...], preferred_element_type=jnp.float32) + b2
    s = jax.nn.sigmoid(h)                                       # (TB, C)

    # Per-(sample, channel) threshold broadcast over L with a 0/1 matrix so
    # the elementwise tail stays lane-dense (no in-kernel reshape).
    thr = average * jnp.dot(s, bcast_ref[...],
                            preferred_element_type=jnp.float32)  # (TB, C*L)

    # Soft threshold:  sign(x) * max(|x| - thr, 0)  ==  x - clip(x, -thr, thr)
    # (thr >= 0 since it is mean(|x|) * sigmoid(.)).  Saves sign + 1 mul/elem.
    o_ref[...] = (x - jnp.clip(x, -thr, thr)).astype(o_ref.dtype)


def _pick_tb(n, cl, *, itemsize=4, target_bytes=512 * 1024, max_tb=1024):
    """Batch tile: aim for 256 KiB - 1 MiB blocks, MXU-aligned, grid >= 4 when
    the batch allows (so v7x can shard the parallel axis over both TCs)."""
    if n <= 8:
        return max(int(n), 1)                 # block == full batch dim
    tb = target_bytes // max(1, cl * itemsize)
    if tb >= 256:
        tb = (tb // 256) * 256                # MXU row alignment (v6e/v7x)
    else:
        tb = max(8, (tb // 8) * 8)            # at least sublane aligned
    tb = int(min(tb, max_tb))
    # Prefer >= 4 grid steps when the batch is big enough (v7x has 2 TCs).
    while tb > 256 and pl.cdiv(n, tb) < 4:
        tb -= 256
    if tb > n:                                # small batch: shrink, keep 8-align
        tb = max(8, (n // 8) * 8)
    return tb


def _vmem_limit_bytes(tb, cl, c):
    """32 MiB floor (v7x-safe); allow up to half physical VMEM on 128 MiB parts."""
    try:
        cap = int(pltpu.get_tpu_info().vmem_capacity_bytes)
    except Exception:
        cap = 64 << 20                        # conservative (v7x per-TC)
    weights = 4 * (2 * cl * c + c * c + 2 * c)
    blocks = 4 * (2 * 2 * tb * cl)            # double-buffered in + out blocks
    need = weights + blocks + (4 << 20)       # headroom for compiler scratch
    return int(min(max(need, 32 << 20), max(cap // 2, 32 << 20)))


def shrinkage_forward(x, params, *, tb=None):
    """x: (N, C, L) float32.  params: PyTorch-layout fc / BN parameters."""
    N, C, L = x.shape
    CL = C * L
    f32 = jnp.float32

    if tb is None:
        tb = _pick_tb(N, CL)
    tb = int(tb)

    # ---- trace-time parameter folding (BN(eval) + GAP into the first Linear) --
    inv_std = jax.lax.rsqrt(params["running_var"].astype(f32) + BN_EPS)
    scale = params["gamma"].astype(f32) * inv_std                       # (C,)
    w1_bn = params["w1"].astype(f32).T * scale[None, :]                 # (C, C)
    b1_bn = ((params["b1"].astype(f32) - params["running_mean"].astype(f32))
             * scale + params["beta"].astype(f32))                      # (C,)

    #   gap = |x|_flat @ P,  P[c*L + l, c] = 1/L   ->  W1f = P @ w1_bn
    pool = jnp.repeat(jnp.eye(C, dtype=f32), L, axis=0) / float(L)      # (CL, C)
    w1f = pool @ w1_bn                                                  # (CL, C)
    w2t = params["w2"].astype(f32).T                                    # (C, C)
    bcast = jnp.repeat(jnp.eye(C, dtype=f32), L, axis=1)                # (C, CL)
    bias = jnp.stack([b1_bn, params["b2"].astype(f32)], axis=0)         # (2, C)

    # Lane-dense layout: contiguous collapse, no HBM copy.  No zero-padding of
    # the batch: the ragged trailing block is handled by Pallas OOB masking.
    x_flat = x.reshape(N, CL)
    grid = (pl.cdiv(N, tb),)

    out_flat = pl.pallas_call(
        shrinkage_kernel,
        out_shape=jax.ShapeDtypeStruct((N, CL), x.dtype),
        grid=grid,
        in_specs=[
            pl.BlockSpec((tb, CL), lambda n: (n, 0)),  # x, lane-dense block
            pl.BlockSpec((CL, C), lambda n: (0, 0)),   # fused pool+fc1+BN weight
            pl.BlockSpec((C, C), lambda n: (0, 0)),    # fc2 weight (transposed)
            pl.BlockSpec((C, CL), lambda n: (0, 0)),   # channel -> L broadcast
            pl.BlockSpec((2, C), lambda n: (0, 0)),    # stacked biases [b1', b2]
        ],
        out_specs=pl.BlockSpec((tb, CL), lambda n: (n, 0)),
        compiler_params=pltpu.CompilerParams(
            dimension_semantics=("parallel",),
            vmem_limit_bytes=_vmem_limit_bytes(tb, CL, C),
        ),
    )(x_flat, w1f, w2t, bcast, bias)

    return out_flat.reshape(N, C, L)


def shrinkage_reference(x, params):
    """Pure-JAX reference mirroring the PyTorch forward (BN in eval mode)."""
    x_raw = x
    x_abs = jnp.abs(x)
    gap = jnp.mean(x_abs, axis=2)                     # AdaptiveAvgPool1d(1)+flatten
    average = jnp.mean(gap, axis=1, keepdims=True)    # (N, 1)
    h = gap @ params["w1"].T + params["b1"]
    h = (h - params["running_mean"]) / jnp.sqrt(params["running_var"] + BN_EPS)
    h = h * params["gamma"] + params["beta"]
    h = jnp.maximum(h, 0.0)
    h = h @ params["w2"].T + params["b2"]
    s = jax.nn.sigmoid(h)
    thr = (average * s)[:, :, None]
    n_sub = jnp.maximum(x_abs - thr, 0.0)
    return jnp.sign(x_raw) * n_sub


def init_params(key, channel):
    ks = jax.random.split(key, 6)
    scale = 1.0 / jnp.sqrt(channel)
    return {
        "w1": jax.random.uniform(ks[0], (channel, channel), jnp.float32, -scale, scale),
        "b1": jax.random.uniform(ks[1], (channel,), jnp.float32, -scale, scale),
        "gamma": jnp.ones((channel,), jnp.float32),
        "beta": jnp.zeros((channel,), jnp.float32),
        "running_mean": 0.1 * jax.random.normal(ks[2], (channel,), jnp.float32),
        "running_var": jax.random.uniform(ks[3], (channel,), jnp.float32, 0.5, 1.5),
        "w2": jax.random.uniform(ks[4], (channel, channel), jnp.float32, -scale, scale),
        "b2": jax.random.uniform(ks[5], (channel,), jnp.float32, -scale, scale),
    }


if __name__ == "__main__":
    key = jax.random.PRNGKey(0)
    k_x, k_p, k_x2 = jax.random.split(key, 3)

    # Main case: (batch, channel, length) with C*L = 128 (lane-dense path).
    N, C, L = 40, 8, 16
    x = jax.random.normal(k_x, (N, C, L), dtype=jnp.float32)
    params = init_params(k_p, C)

    # 1) Auto-picked tile (tb == 40, single block).
    out = jax.block_until_ready(shrinkage_forward(x, params))
    ref = shrinkage_reference(x, params)
    assert out.shape == (N, C, L)
    err = jnp.max(jnp.abs(out - ref))
    assert jnp.allclose(out, ref, atol=1e-4, rtol=1e-4), f"max abs err = {err}"

    # 2) Explicit small tile -> grid of 3 with a ragged (masked) trailing block,
    #    exercising the pad-free multi-block path.
    out2 = jax.block_until_ready(shrinkage_forward(x, params, tb=16))
    err2 = jnp.max(jnp.abs(out2 - ref))
    assert jnp.allclose(out2, ref, atol=1e-4, rtol=1e-4), f"max abs err = {err2}"

    # 3) C*L not a multiple of 128 (full-dim block exception; masked stores,
    #    slower but correct) plus a ragged batch.
    N3, C3, L3 = 10, 4, 16
    x3 = jax.random.normal(k_x2, (N3, C3, L3), dtype=jnp.float32)
    params3 = init_params(k_p, C3)
    out3 = jax.block_until_ready(shrinkage_forward(x3, params3))
    ref3 = shrinkage_reference(x3, params3)
    err3 = jnp.max(jnp.abs(out3 - ref3))
    assert jnp.allclose(out3, ref3, atol=1e-4, rtol=1e-4), f"max abs err = {err3}"

    print("KERNEL_OK")
</pallas_src>

<mosaic_0001>
module attributes {stable_mosaic.version = 11 : i64} {
  func.func @shrinkage_kernel(%arg0: i32, %arg1: memref<40x128xf32, #tpu.memory_space<vmem>>, %arg2: memref<128x8xf32, #tpu.memory_space<vmem>>, %arg3: memref<8x8xf32, #tpu.memory_space<vmem>>, %arg4: memref<8x128xf32, #tpu.memory_space<vmem>>, %arg5: memref<2x8xf32, #tpu.memory_space<vmem>>, %arg6: memref<40x128xf32, #tpu.memory_space<vmem>>) attributes {dimension_semantics = [#tpu.dimension_semantics<parallel>], iteration_bounds = array<i64: 1>, scalar_prefetch = 0 : i64, scratch_operands = 0 : i64, tpu.core_type = #tpu.core_type<tc>, window_params = [{transform_indices = @transform_0, window_bounds = array<i64: 40, 128>}, {pipeline_mode = #tpu.pipeline_mode<synchronous>, transform_indices = @transform_1, window_bounds = array<i64: 128, 8>}, {pipeline_mode = #tpu.pipeline_mode<synchronous>, transform_indices = @transform_2, window_bounds = array<i64: 8, 8>}, {pipeline_mode = #tpu.pipeline_mode<synchronous>, transform_indices = @transform_3, window_bounds = array<i64: 8, 128>}, {pipeline_mode = #tpu.pipeline_mode<synchronous>, transform_indices = @transform_4, window_bounds = array<i64: 2, 8>}, {transform_indices = @transform_5, window_bounds = array<i64: 40, 128>}]} {
    %c0 = arith.constant 0 : index
    %c0_0 = arith.constant 0 : index
    %0 = vector.load %arg1[%c0, %c0_0] : memref<40x128xf32, #tpu.memory_space<vmem>>, vector<40x128xf32>
    %1 = math.absf %0 : vector<40x128xf32>
    %cst = arith.constant dense<0.000000e+00> : vector<40xf32>
    %2 = vector.multi_reduction <add>, %1, %cst [1] : vector<40x128xf32> to vector<40xf32>
    %3 = vector.shape_cast %2 : vector<40xf32> to vector<40x1xf32>
    %cst_1 = arith.constant 1.280000e+02 : f32
    %4 = vector.broadcast %cst_1 : f32 to vector<40x1xf32>
    %5 = arith.divf %3, %4 : vector<40x1xf32>
    %c0_2 = arith.constant 0 : index
    %c0_3 = arith.constant 0 : index
    %6 = vector.load %arg5[%c0_2, %c0_3] : memref<2x8xf32, #tpu.memory_space<vmem>>, vector<2x8xf32>
    %7 = vector.extract_strided_slice %6 {offsets = [0, 0], sizes = [1, 8], strides = [1, 1]} : vector<2x8xf32> to vector<1x8xf32>
    %8 = vector.extract_strided_slice %6 {offsets = [1, 0], sizes = [1, 8], strides = [1, 1]} : vector<2x8xf32> to vector<1x8xf32>
    %c0_4 = arith.constant 0 : index
    %c0_5 = arith.constant 0 : index
    %9 = vector.load %arg2[%c0_4, %c0_5] : memref<128x8xf32, #tpu.memory_space<vmem>>, vector<128x8xf32>
    %cst_6 = arith.constant dense<0.000000e+00> : vector<40x8xf32>
    %10 = tpu.matmul %1, %9, %cst_6 {dimension_numbers = #tpu.dot_dimension_numbers<[1], [0], [0], [1], [0, 0, 1, 1], [], []>} : vector<40x128xf32>, vector<128x8xf32>, vector<40x8xf32> -> vector<40x8xf32>
    %11 = vector.broadcast %7 : vector<1x8xf32> to vector<40x8xf32>
    %12 = arith.addf %10, %11 : vector<40x8xf32>
    %cst_7 = arith.constant 0.000000e+00 : f32
    %13 = vector.broadcast %cst_7 : f32 to vector<40x8xf32>
    %14 = arith.maximumf %12, %13 : vector<40x8xf32>
    %c0_8 = arith.constant 0 : index
    %c0_9 = arith.constant 0 : index
    %15 = vector.load %arg3[%c0_8, %c0_9] : memref<8x8xf32, #tpu.memory_space<vmem>>, vector<8x8xf32>
    %cst_10 = arith.constant dense<0.000000e+00> : vector<40x8xf32>
    %16 = tpu.matmul %14, %15, %cst_10 {dimension_numbers = #tpu.dot_dimension_numbers<[1], [0], [0], [1], [0, 0, 1, 1], [], []>} : vector<40x8xf32>, vector<8x8xf32>, vector<40x8xf32> -> vector<40x8xf32>
    %17 = vector.broadcast %8 : vector<1x8xf32> to vector<40x8xf32>
    %18 = arith.addf %16, %17 : vector<40x8xf32>
    %19 = arith.negf %18 : vector<40x8xf32>
    %20 = math.exp %19 : vector<40x8xf32>
    %cst_11 = arith.constant 1.000000e+00 : f32
    %21 = vector.broadcast %cst_11 : f32 to vector<40x8xf32>
    %22 = arith.addf %21, %20 : vector<40x8xf32>
    %23 = arith.divf %21, %22 : vector<40x8xf32>
    %c0_12 = arith.constant 0 : index
    %c0_13 = arith.constant 0 : index
    %24 = vector.load %arg4[%c0_12, %c0_13] : memref<8x128xf32, #tpu.memory_space<vmem>>, vector<8x128xf32>
    %cst_14 = arith.constant dense<0.000000e+00> : vector<40x128xf32>
    %25 = tpu.matmul %23, %24, %cst_14 {dimension_numbers = #tpu.dot_dimension_numbers<[1], [0], [0], [1], [0, 0, 1, 1], [], []>} : vector<40x8xf32>, vector<8x128xf32>, vector<40x128xf32> -> vector<40x128xf32>
    %26 = vector.broadcast %5 : vector<40x1xf32> to vector<40x128xf32>
    %27 = arith.mulf %26, %25 : vector<40x128xf32>
    %cst_15 = arith.constant 0.000000e+00 : f32
    %28 = vector.broadcast %cst_15 : f32 to vector<40x128xf32>
    %29 = arith.subf %28, %27 : vector<40x128xf32>
    %30 = arith.maximumf %29, %0 : vector<40x128xf32>
    %31 = arith.minimumf %27, %30 : vector<40x128xf32>
    %32 = arith.subf %0, %31 : vector<40x128xf32>
    %c0_16 = arith.constant 0 : index
    %c0_17 = arith.constant 0 : index
    %33 = vector.load %arg6[%c0_16, %c0_17] : memref<40x128xf32, #tpu.memory_space<vmem>>, vector<40x128xf32>
    tpu.vector_store %arg6[%c0_16, %c0_17], %32 {strides = array<i32>} : memref<40x128xf32, #tpu.memory_space<vmem>>, vector<40x128xf32>,
    return
  }
  func.func @transform_0(%arg0: i32) -> (i32, i32) {
    %c0_i32 = arith.constant 0 : i32
    %c0_i32_0 = arith.constant 0 : i32
    return %arg0, %c0_i32 : i32, i32
  }
  func.func @transform_1(%arg0: i32) -> (i32, i32) {
    %c0_i32 = arith.constant 0 : i32
    %c0_i32_0 = arith.constant 0 : i32
    %c0_i32_1 = arith.constant 0 : i32
    return %c0_i32, %c0_i32_0 : i32, i32
  }
  func.func @transform_2(%arg0: i32) -> (i32, i32) {
    %c0_i32 = arith.constant 0 : i32
    %c0_i32_0 = arith.constant 0 : i32
    %c0_i32_1 = arith.constant 0 : i32
    return %c0_i32, %c0_i32_0 : i32, i32
  }
  func.func @transform_3(%arg0: i32) -> (i32, i32) {
    %c0_i32 = arith.constant 0 : i32
    %c0_i32_0 = arith.constant 0 : i32
    %c0_i32_1 = arith.constant 0 : i32
    return %c0_i32, %c0_i32_0 : i32, i32
  }
  func.func @transform_4(%arg0: i32) -> (i32, i32) {
    %c0_i32 = arith.constant 0 : i32
    %c0_i32_0 = arith.constant 0 : i32
    %c0_i32_1 = arith.constant 0 : i32
    return %c0_i32, %c0_i32_0 : i32, i32
  }
  func.func @transform_5(%arg0: i32) -> (i32, i32) {
    %c0_i32 = arith.constant 0 : i32
    %c0_i32_0 = arith.constant 0 : i32
    return %arg0, %c0_i32 : i32, i32
  }
}

</mosaic_0001>

<bundles_post_ra>
// kernel: tpu_custom_call.1
= control target key start
LH: loop header
LB: loop body
LE: loop exit
PB: predicated region body
PF: predicated region fallthrough
CT: control target
= control target key end

     0   :  { %v632_v1 = vmov 0.0   ;;  %vm633_vm0 = vmmov 0   ;;  %s825_s0 = inlined_call_operand.vmem [shape: f32[40,128], index: 0, kind: input, shape index: {}]   ;;  %s826_s1 = inlined_call_operand.vmem [shape: f32[128,8], index: 1, kind: input, shape index: {}]   ;;  %s827_s2 = inlined_call_operand.vmem [shape: f32[8,8], index: 2, kind: input, shape index: {}]   ;;  %s828_s3 = inlined_call_operand.vmem [shape: f32[8,128], index: 3, kind: input, shape index: {}]   ;;  %s829_s4 = inlined_call_operand.vmem [shape: f32[2,8], index: 4, kind: input, shape index: {}]   ;;  %s830_s5 = inlined_call_operand.hbm [shape: f32[40,128], index: 5, kind: output, shape index: {}]  }
   0x1   :  { %v63_v0 = vld [vmem:[%s826_s1 + $0x78] sm:$0xff]  ;;  %504 = vmatprep.subr.mxu0 %v632_v1  ;;  %v62_v2 = vld [vmem:[%s826_s1 + $0x70] sm:$0xff]  ;;  %536 = vmatprep.mubr.msk.f32.mxu0 %vm633_vm0, %v632_v1  ;;  %v61_v3 = vld [vmem:[%s826_s1 + $0x68] sm:$0xff] }
   0x2   :  { %505 = vmatpush3.msra.mxu0 %v63_v0  ;;  %551 = vmatprep.subr.mxu1 %v632_v1  ;;  %v60_v4 = vld [vmem:[%s826_s1 + $0x60] sm:$0xff]  ;;  %v696_v7 = vld [vmem:[%s825_s0 + $0x10] sm:$0xff]  ;;  %v59_v8 = vld [vmem:[%s826_s1 + $0x58] sm:$0xff] }
   0x3   :  { %506 = vmatprep.subr.mxu0 %v632_v1  ;;  %553 = vmatprep.mubr.msk.f32.mxu1 %vm633_vm0, %v632_v1  ;;  %v690_v5 = vld [vmem:[%s825_s0] sm:$0xff]  ;;  %v705_v9 = vld [vmem:[%s825_s0 + $0x8] sm:$0xff]  ;;  %v28_v10 = vand.u32 2147483647, %v696_v7  ;;  %v711_v11 = vld [vmem:[%s825_s0 + $0x18] sm:$0xff] }
   0x4   :  { %507 = vmatpush3.msra.mxu0 %v62_v2  ;;  %v26_v6 = vand.u32 2147483647, %v690_v5 }
   0x5   :  { %508 = vmatprep.subr.mxu0 %v632_v1 }
   0x6   :  { %509 = vmatpush3.msra.mxu0 %v61_v3  ;;  %31 = vadd.xlane.f32.xlu0 %v26_v6 }
   0x7   :  { %510 = vmatprep.subr.mxu0 %v632_v1 }
   0x8   :  { %511 = vmatpush3.msra.mxu0 %v60_v4 }
   0x9   :  { %10 = vsyncpa [#allocation3], 0  ;;  %512 = vmatprep.subr.mxu0 %v632_v1  ;;  %v58_v12 = vld [vmem:[%s826_s1 + $0x50] sm:$0xff]  ;;  %35 = vadd.xlane.f32.xlu1 %v28_v10  ;;  %v27_v13 = vand.u32 2147483647, %v705_v9  ;;  %v57_v14 = vld [vmem:[%s826_s1 + $0x48] sm:$0xff]  ;;  %v64_v28 = vlaneseq }
   0xa   :  { %513 = vmatpush3.msra.mxu0 %v59_v8  ;;  %v29_v15 = vand.u32 2147483647, %v711_v11  ;;  %v726_v16 = vld [vmem:[%s825_s0 + $0x20] sm:$0xff]  ;;  %v55_v19 = vld [vmem:[%s826_s1 + $0x38] sm:$0xff]  ;;  %v54_v20 = vld [vmem:[%s826_s1 + $0x30] sm:$0xff]  ;;  %vm168_vm1 = vcmask 64512  }
   0xb   :  { %514 = vmatprep.subr.mxu0 %v632_v1  ;;  %33 = vadd.xlane.f32.xlu0 %v27_v13  ;;  %v56_v17 = vld [vmem:[%s826_s1 + $0x40] sm:$0xff]  ;;  %v30_v18 = vand.u32 2147483647, %v726_v16  ;;  %v53_v21 = vld [vmem:[%s826_s1 + $0x28] sm:$0xff]  ;;  %v51_v23 = vld [vmem:[%s826_s1 + $0x18] sm:$0xff]  ;;  %v65_v29 = vshrl.u32 %v64_v28, 7 }
   0xc   :  { %515 = vmatpush3.msra.mxu0 %v58_v12  ;;  %v52_v22 = vld [vmem:[%s826_s1 + $0x20] sm:$0xff]  ;;  %v50_v24 = vld [vmem:[%s826_s1 + $0x10] sm:$0xff]  ;;  %v49_v25 = vld [vmem:[%s826_s1 + $0x8] sm:$0xff] }
   0xd   :  { %516 = vmatprep.subr.mxu0 %v632_v1  ;;  %37 = vadd.xlane.f32.xlu1 %v29_v15  ;;  %v48_v26 = vld [vmem:[%s826_s1] sm:$0xff]  ;;  %v66_v30 = vsub.s32 0, %v65_v29  ;;  %v166_v54 = vsub.s32 1, %v65_v29 }
   0xe   :  { %517 = vmatpush3.msra.mxu0 %v57_v14  ;;  %v163_v27 = vld [vmem:[%s827_s2] sm:$0xff] }
   0xf   :  { %518 = vmatprep.subr.mxu0 %v632_v1  ;;  %39 = vadd.xlane.f32.xlu0 %v30_v18  ;;  %v47_v31 = vld [vmem:[%s829_s4] sm:$0x3] }
  0x10   :  { %519 = vmatpush3.msra.mxu0 %v56_v17  ;;  %552 = vmatpush3.msra.mxu1 %v163_v27  ;;  %v67_v32 = vrot.slane %v47_v31, %v66_v30  ;;  %v304_v53 = vld [vmem:[%s828_s3] sm:$0xff]  ;;  %v167_v55 = vrot.slane %v47_v31, %v166_v54  ;;  %s634_s3 = smov [#allocation2]  }
  0x11   :  { %520 = vmatprep.subr.mxu0 %v632_v1  ;;  %568 = vmatprep.subr.mxu1 %v632_v1  ;;  %s445_s12 = sshll.u32 %s634_s3, 4  ;;  %s446_s12 = int_to_ptr.vmem [resolvable:$true] %s445_s12 }
  0x12   :  { %521 = vmatpush3.msra.mxu0 %v55_v19  ;;  %s610_s13 = scalar_lea.vmem %s446_s12, 640  ;;  %p615_p1 = scmp.lt.s32.totalorder %s446_s12, %s446_s12 }
  0x13   :  { %522 = vmatprep.subr.mxu0 %v632_v1  ;;  %p611_p0 = scmp.ne.s32.totalorder %s446_s12, %s610_s13  ;;  %p616_p2 = scmp.lt.s32.totalorder %s610_s13, %s610_s13 }
  0x14   :  { %523 = vmatpush3.msra.mxu0 %v54_v20 }
  0x15   :  { %524 = vmatprep.subr.mxu0 %v632_v1  ;;  %p617_p3 = por %p616_p2, %p615_p1 }
  0x16   :  { %525 = vmatpush3.msra.mxu0 %v53_v21 }
  0x17   :  { %526 = vmatprep.subr.mxu0 %v632_v1  ;;  %p618_p4 = pnand %p617_p3, %p611_p0 }
  0x18   :  { %527 = vmatpush3.msra.mxu0 %v52_v22 }
  0x19   :  { %528 = vmatprep.subr.mxu0 %v632_v1 }
  0x1a   :  { %529 = vmatpush3.msra.mxu0 %v51_v23 }
  0x1b   :  { %530 = vmatprep.subr.mxu0 %v632_v1 }
  0x1c   :  { %531 = vmatpush3.msra.mxu0 %v50_v24 }
  0x1d   :  { %532 = vmatprep.subr.mxu0 %v632_v1 }
  0x1e   :  { %533 = vmatpush3.msra.mxu0 %v49_v25 }
  0x1f   :  { %534 = vmatprep.subr.mxu0 %v632_v1 }
  0x20   :  { %535 = vmatpush3.msra.mxu0 %v48_v26 }
  0x21   :  { %537 = vmatmul.mubr.f32.vlgmr.msra.gmra.mxu0 %v26_v6 }
  0x22   :  { %539 = vmatprep.mubr.msk.f32.mxu0 %vm633_vm0, %v632_v1 }
  0x25   :  { %540 = vmatmul.mubr.f32.gmra.mxu0 %v27_v13 }
  0x26   :  { %542 = vmatprep.mubr.msk.f32.mxu0 %vm633_vm0, %v632_v1 }
  0x29   :  { %543 = vmatmul.mubr.f32.gmra.mxu0 %v28_v10 }
  0x2a   :  { %545 = vmatprep.mubr.msk.f32.mxu0 %vm633_vm0, %v632_v1 }
  0x2d   :  { %546 = vmatmul.mubr.f32.gmra.mxu0 %v29_v15 }
  0x2e   :  { %548 = vmatprep.mubr.msk.f32.mxu0 %vm633_vm0, %v632_v1 }
  0x31   :  { %549 = vmatmul.mubr.f32.gmra.mxu0 %v30_v18 }
  0xe1   :  { %v134_v33 = vpop.f32.mrf.mxu0 }
  0xe2   :  { %v135_v34 = vadd.f32 %v134_v33, %v67_v32  ;;  %v32_v33 = vpop.xlane.xlu0 %31 }
  0xe3   :  { %v538_v35 = vpop.f32.mrf.mxu0 }
  0xe4   :  { %v158_v36 = vmax.f32 %v135_v34, 0.0  ;;  %v42_v34 = vmul.f32 0.0078125, %v32_v33 }
  0xe5   :  { %v139_v37 = vpop.f32.mrf.mxu0 }
  0xe6   :  { %v140_v38 = vadd.f32 %v139_v37, %v67_v32  ;;  %554 = vmatmul.mubr.msk.f32.vlgmr.msra.gmra.mxu1 %vm168_vm1, %v158_v36  ;;  %v34_v35 = vpop.xlane.xlu0 %33  ;;  %v36_v37 = vpop.xlane.xlu1 %35 }
  0xe7   :  { %v541_v39 = vpop.f32.mrf.mxu0  ;;  %556 = vmatprep.mubr.msk.f32.mxu1 %vm633_vm0, %v632_v1  ;;  %569 = vmatpush3.msra.mxu1 %v304_v53 }
  0xe8   :  { %v159_v40 = vmax.f32 %v140_v38, 0.0  ;;  %v43_v39 = vmul.f32 0.0078125, %v34_v35 }
  0xe9   :  { %v144_v41 = vpop.f32.mrf.mxu0 }
  0xea   :  { %v145_v42 = vadd.f32 %v144_v41, %v67_v32  ;;  %557 = vmatmul.mubr.msk.f32.gmra.mxu1 %vm168_vm1, %v159_v40 }
  0xeb   :  { %v544_v43 = vpop.f32.mrf.mxu0  ;;  %559 = vmatprep.mubr.msk.f32.mxu1 %vm633_vm0, %v632_v1 }
  0xec   :  { %v160_v44 = vmax.f32 %v145_v42, 0.0 }
  0xed   :  { %v149_v45 = vpop.f32.mrf.mxu0 }
  0xee   :  { %v150_v46 = vadd.f32 %v149_v45, %v67_v32  ;;  %560 = vmatmul.mubr.msk.f32.gmra.mxu1 %vm168_vm1, %v160_v44  ;;  %v44_v45 = vmul.f32 0.0078125, %v36_v37 }
  0xef   :  { %v547_v47 = vpop.f32.mrf.mxu0  ;;  %562 = vmatprep.mubr.msk.f32.mxu1 %vm633_vm0, %v632_v1 }
  0xf0   :  { %v161_v48 = vmax.f32 %v150_v46, 0.0  ;;  %v38_v47 = vpop.xlane.xlu1 %37 }
  0xf1   :  { %v154_v49 = vpop.f32.mrf.mxu0  ;;  %v45_v53 = vmul.f32 0.0078125, %v38_v47 }
  0xf2   :  { %v155_v50 = vadd.f32 %v154_v49, %v67_v32  ;;  %563 = vmatmul.mubr.msk.f32.gmra.mxu1 %vm168_vm1, %v161_v48 }
  0xf3   :  { %v550_v51 = vpop.f32.mrf.mxu0  ;;  %565 = vmatprep.mubr.msk.f32.mxu1 %vm633_vm0, %v632_v1 }
  0xf4   :  { %v162_v52 = vmax.f32 %v155_v50, 0.0 }
  0xf6   :  { %566 = vmatmul.mubr.msk.f32.gmra.mxu1 %vm168_vm1, %v162_v52 }
  0xf7   :  { %570 = vmatprep.mubr.msk.f32.mxu1 %vm633_vm0, %v632_v1 }
 0x1a6   :  { %v250_v56 = vpop.f32.mrf.mxu1 }
 0x1a7   :  { %v251_v57 = vadd.f32 %v250_v56, %v167_v55 }
 0x1a8   :  { %v555_v58 = vpop.f32.mrf.mxu1 }
 0x1a9   :  { %v461_v59 = vmul.f32 -1.442695, %v251_v57  ;;  %v40_v57 = vpop.xlane.xlu0 %39 }
 0x1aa   :  { %v255_v60 = vpop.f32.mrf.mxu1 }
 0x1ab   :  { %590 = vpow2.f32 %v461_v59  ;;  %v256_v61 = vadd.f32 %v255_v60, %v167_v55 }
 0x1ac   :  { %v558_v62 = vpop.f32.mrf.mxu1 }
 0x1ad   :  { %v462_v63 = vmul.f32 -1.442695, %v256_v61  ;;  %v46_v62 = vmul.f32 0.0078125, %v40_v57 }
 0x1ae   :  { %v260_v0 = vpop.f32.mrf.mxu1 }
 0x1af   :  { %592 = vpow2.f32 %v462_v63  ;;  %v261_v2 = vadd.f32 %v260_v0, %v167_v55 }
 0x1b0   :  { %v561_v3 = vpop.f32.mrf.mxu1 }
 0x1b1   :  { %v463_v4 = vmul.f32 -1.442695, %v261_v2 }
 0x1b2   :  { %v265_v6 = vpop.f32.mrf.mxu1 }
 0x1b3   :  { %594 = vpow2.f32 %v463_v4  ;;  %v266_v8 = vadd.f32 %v265_v6, %v167_v55 }
 0x1b4   :  { %v564_v10 = vpop.f32.mrf.mxu1 }
 0x1b5   :  { %v464_v12 = vmul.f32 -1.442695, %v266_v8 }
 0x1b6   :  { %v270_v13 = vpop.f32.mrf.mxu1 }
 0x1b7   :  { %596 = vpow2.f32 %v464_v12  ;;  %v271_v14 = vadd.f32 %v270_v13, %v167_v55 }
 0x1b8   :  { %v591_v15 = vpop.eup %590  ;;  %v567_v17 = vpop.f32.mrf.mxu1 }
 0x1b9   :  { %v289_v18 = vadd.f32 1.0, %v591_v15  ;;  %v465_v19 = vmul.f32 -1.442695, %v271_v14 }
 0x1bb   :  { %598 = vrcp.f32 %v289_v18 }
 0x1bc   :  { %v593_v20 = vpop.eup %592  ;;  %600 = vpow2.f32 %v465_v19 }
 0x1bd   :  { %v290_v21 = vadd.f32 1.0, %v593_v20 }
 0x1bf   :  { %602 = vrcp.f32 %v290_v21 }
 0x1c0   :  { %v595_v22 = vpop.eup %594 }
 0x1c1   :  { %v291_v23 = vadd.f32 1.0, %v595_v22 }
 0x1c3   :  { %604 = vrcp.f32 %v291_v23 }
 0x1c4   :  { %v597_v24 = vpop.eup %596 }
 0x1c5   :  { %v292_v25 = vadd.f32 1.0, %v597_v24 }
 0x1c7   :  { %606 = vrcp.f32 %v292_v25 }
 0x1c8   :  { %v599_v26 = vpop.eup %598 }
 0x1c9   :  { %v601_v27 = vpop.eup %600  ;;  %571 = vmatmul.mubr.msk.f32.vlgmr.msra.gmra.mxu1 %vm168_vm1, %v599_v26 }
 0x1ca   :  { %v293_v28 = vadd.f32 1.0, %v601_v27  ;;  %573 = vmatprep.mubr.msk.f32.mxu1 %vm633_vm0, %v632_v1 }
 0x1cc   :  { %v603_v29 = vpop.eup %602  ;;  %608 = vrcp.f32 %v293_v28 }
 0x1cd   :  { %574 = vmatmul.mubr.msk.f32.gmra.mxu1 %vm168_vm1, %v603_v29 }
 0x1ce   :  { %576 = vmatprep.mubr.msk.f32.mxu1 %vm633_vm0, %v632_v1 }
 0x1d0   :  { %v605_v30 = vpop.eup %604 }
 0x1d1   :  { %577 = vmatmul.mubr.msk.f32.gmra.mxu1 %vm168_vm1, %v605_v30 }
 0x1d2   :  { %579 = vmatprep.mubr.msk.f32.mxu1 %vm633_vm0, %v632_v1 }
 0x1d4   :  { %v607_v31 = vpop.eup %606 }
 0x1d5   :  { %580 = vmatmul.mubr.msk.f32.gmra.mxu1 %vm168_vm1, %v607_v31 }
 0x1d6   :  { %582 = vmatprep.mubr.msk.f32.mxu1 %vm633_vm0, %v632_v1 }
 0x1d9   :  { %v609_v32 = vpop.eup %608 }
 0x1da   :  { %583 = vmatmul.mubr.msk.f32.gmra.mxu1 %vm168_vm1, %v609_v32 }
 0x289   :  { %v386_v36 = vpop.f32.mrf.mxu1 }
 0x28a   :  { %v410_v38 = vmul.f32 %v386_v36, %v42_v34 }
 0x28b   :  { %v572_v40 = vpop.f32.mrf.mxu1 }
 0x28c   :  { %v415_v41 = vsub.f32 0.0, %v410_v38 }
 0x28d   :  { %v391_v42 = vpop.f32.mrf.mxu1 }
 0x28e   :  { %v420_v43 = vmax.f32 %v415_v41, %v690_v5  ;;  %v411_v44 = vmul.f32 %v391_v42, %v43_v39 }
 0x28f   :  { %v575_v46 = vpop.f32.mrf.mxu1 }
 0x290   :  { %v425_v1 = vmin.f32 %v410_v38, %v420_v43  ;;  %v416_v48 = vsub.f32 0.0, %v411_v44 }
 0x291   :  { %v396_v49 = vpop.f32.mrf.mxu1 }
 0x292   :  { %v430_v50 = vsub.f32 %v690_v5, %v425_v1  ;;  %v421_v51 = vmax.f32 %v416_v48, %v705_v9  ;;  %v412_v52 = vmul.f32 %v396_v49, %v44_v45 }
 0x293   :  { %v578_v54 = vpop.f32.mrf.mxu1 }
 0x294   :  { %435 = vst [vmem:[#allocation2] sm:$0xff] %v430_v50  ;;  %v426_v55 = vmin.f32 %v411_v44, %v421_v51  ;;  %v417_v56 = vsub.f32 0.0, %v412_v52 }
 0x295   :  { %v401_v58 = vpop.f32.mrf.mxu1 }
 0x296   :  { %v431_v59 = vsub.f32 %v705_v9, %v426_v55  ;;  %v422_v60 = vmax.f32 %v417_v56, %v696_v7  ;;  %v413_v61 = vmul.f32 %v401_v58, %v45_v53 }
 0x297   :  { %v581_v63 = vpop.f32.mrf.mxu1 }
 0x298   :  { %436 = vst [vmem:[#allocation2 + $0x8] sm:$0xff] %v431_v59  ;;  %v427_v0 = vmin.f32 %v412_v52, %v422_v60  ;;  %v418_v5 = vsub.f32 0.0, %v413_v61 }
 0x29a   :  { %v432_v2 = vsub.f32 %v696_v7, %v427_v0  ;;  %v423_v3 = vmax.f32 %v418_v5, %v711_v11  ;;  %v406_v4 = vpop.f32.mrf.mxu1 }
 0x29b   :  { %v414_v6 = vmul.f32 %v406_v4, %v46_v62 }
 0x29c   :  { %437 = vst [vmem:[#allocation2 + $0x10] sm:$0xff] %v432_v2  ;;  %v428_v8 = vmin.f32 %v413_v61, %v423_v3  ;;  %v584_v10 = vpop.f32.mrf.mxu1 }
 0x29d   :  { %v419_v12 = vsub.f32 0.0, %v414_v6 }
 0x29e   :  { %v433_v9 = vsub.f32 %v711_v11, %v428_v8 }
 0x29f   :  { %v424_v13 = vmax.f32 %v419_v12, %v726_v16 }
 0x2a0   :  { %438 = vst [vmem:[#allocation2 + $0x18] sm:$0xff] %v433_v9 }
 0x2a1   :  { %v429_v14 = vmin.f32 %v414_v6, %v424_v13 }
 0x2a3   :  { %v434_v15 = vsub.f32 %v726_v16, %v429_v14 }
 0x2a5   :  { %439 = vst [vmem:[#allocation2 + $0x20] sm:$0xff] %v434_v15 }
 0x2a6   :  { %621 = shalt.err (!%p618_p4)
}
 0x2a7   :  { %s635_s14 = smov 128   ;;  %s636_s15 = smov 8  }
 0x2a8   :  { %451 = dma.vmem_to_hbm [thread:$0]  %s446_s12, 640, %s830_s5, [#allocation3], %s635_s14, %s635_s14, %s636_s15  }
 0x2a9   :  { %630 = dma.done.wait [#allocation3], 640  }
 0x2aa   :  { %631 = vsyncadd [#allocation3], 4294966656 }
 0x2ab   :  { %455 = vsyncpa [#allocation3], 1 }

</bundles_post_ra>
